<compile_context>
chip_gen: v7x
topology: tpu7x:2x2x1
jax: 0.10.0
libtpu: 0.0.40
codegen_flags: <defaults>
</compile_context>

<pallas_src>
import functools

import jax
import jax.numpy as jnp
from jax.experimental import pallas as pl
from jax.experimental.pallas import tpu as pltpu


# ----------------------------------------------------------------------------
# Pallas kernel: masked cross-entropy, pixel-on-lane, lane-wide accumulation
# ----------------------------------------------------------------------------
def _ce_kernel(logits_ref, target_ref, sum_ref, cnt_ref, *,
               ignore_label, num_pixels, tile_p, tiles_per_split,
               need_pixel_mask):
    t = pl.program_id(2)

    @pl.when(t == 0)
    def _():
        sum_ref[...] = jnp.zeros_like(sum_ref)
        cnt_ref[...] = jnp.zeros_like(cnt_ref)

    logits = logits_ref[...].astype(jnp.float32)         # (1, C, TP)
    tgt = target_ref[...]                                 # (1, 1, TP) int32
    C = logits.shape[1]

    # valid pixel mask: not ignore_label, and -- only when a tile can be
    # partial or an overflow tile of a ragged split -- inside the true pixel
    # range (garbage lanes past HW are dropped by the elementwise select).
    valid = tgt != ignore_label                            # (1, 1, TP)
    if need_pixel_mask:
        tile_idx = pl.program_id(1) * tiles_per_split + t
        bound = num_pixels - tile_idx * tile_p             # scalar int32
        in_range = jax.lax.broadcasted_iota(jnp.int32, tgt.shape, 2) < bound
        valid = jnp.logical_and(valid, in_range)

    # numerically-stable logsumexp over the class axis (sublane direction);
    # the picked target logit is taken from the already-shifted logits, so
    # lse - picked == log(sumexp) - picked_shifted (no extra broadcast add).
    m = jnp.max(logits, axis=1, keepdims=True)                          # (1,1,TP)
    shifted = logits - m                                                # (1,C,TP)
    sumexp = jnp.sum(jnp.exp(shifted), axis=1, keepdims=True)           # (1,1,TP)

    class_ids = jax.lax.broadcasted_iota(jnp.int32, (1, C, 1), 1)       # (1,C,1)
    onehot = class_ids == tgt                                           # (1,C,TP)
    picked = jnp.sum(jnp.where(onehot, shifted, 0.0), axis=1, keepdims=True)

    per_px = jnp.where(valid, jnp.log(sumexp) - picked, 0.0)            # (1,1,TP)

    # lane-wide accumulation into the VMEM-resident output blocks;
    # the cross-lane reduce happens once, in the wrapper.
    sum_ref[...] += per_px
    cnt_ref[...] += valid.astype(jnp.float32)


def _masked_ce_pallas(logits, labels, ignore_label, *, max_tile_p=32768,
                      vmem_budget_bytes=24 * 1024 * 1024):
    """logits: (N, C, HW) float, labels: (N, 1, HW) int32. Returns (sum, count)."""
    N, C, HW = logits.shape

    # Tiny-image safety: guarantee at least one full 128-lane row so a block
    # never exceeds the array along the lane axis.  Padded pixels carry
    # ignore_label so they never contribute.
    if HW < 128:
        pad = 128 - HW
        logits = jnp.pad(logits, ((0, 0), (0, 0), (0, pad)))
        labels = jnp.pad(labels, ((0, 0), (0, 0), (0, pad)),
                         constant_values=ignore_label)
        HW = 128

    itemsize = jnp.dtype(logits.dtype).itemsize

    # VMEM-aware lane tile: multiple of 128, as large as max_tile_p / the
    # lane-rounded pixel extent / the double-buffered VMEM budget allow.
    bytes_per_px = 2 * (C * itemsize + 4) + 4 * 4   # 2x(logits+labels) + 2 f32 accs
    tp_budget = max(128, (vmem_budget_bytes // bytes_per_px // 128) * 128)
    tp = int(min(max_tile_p, (HW // 128) * 128, tp_budget))
    n_tiles = int(pl.cdiv(HW, tp))

    # Megacore-friendly split of the pixel-tile range (v7x has 2 TensorCores;
    # harmless on single-TC v5e/v6e).  Ragged splits create overflow tiles
    # which are clamped to the last real tile and fully masked in-kernel.
    n_splits = 2 if n_tiles >= 2 else 1
    tiles_per_split = int(pl.cdiv(n_tiles, n_splits))
    ragged_split = n_splits * tiles_per_split != n_tiles
    need_pixel_mask = (HW % tp != 0) or ragged_split

    if ragged_split:
        def tile_map(n, s, t):
            return (n, 0, jnp.minimum(s * tiles_per_split + t, n_tiles - 1))
    else:
        def tile_map(n, s, t):
            return (n, 0, s * tiles_per_split + t)

    def out_map(n, s, t):
        return (n * n_splits + s, 0, 0)

    kernel = functools.partial(
        _ce_kernel, ignore_label=ignore_label, num_pixels=HW, tile_p=tp,
        tiles_per_split=tiles_per_split, need_pixel_mask=need_pixel_mask)

    # Explicit scoped-VMEM limit: ~2x the live block set, floored at the 32 MiB
    # scoped default and capped safely below v7x's 64 MiB physical VMEM.
    block_bytes = tp * bytes_per_px
    vmem_limit = int(min(48 * 1024 * 1024,
                         max(32 * 1024 * 1024, 2 * block_bytes)))

    out_sum, out_cnt = pl.pallas_call(
        kernel,
        out_shape=(jax.ShapeDtypeStruct((N * n_splits, 1, tp), jnp.float32),
                   jax.ShapeDtypeStruct((N * n_splits, 1, tp), jnp.float32)),
        grid_spec=pltpu.PrefetchScalarGridSpec(
            num_scalar_prefetch=0,
            grid=(N, n_splits, tiles_per_split),
            in_specs=[
                pl.BlockSpec((1, C, tp), tile_map),
                # TODO(synk): stream labels as int8/int16 when C < 128 for a
                # further ~2-5% bandwidth saving.
                pl.BlockSpec((1, 1, tp), tile_map),
            ],
            out_specs=[
                pl.BlockSpec((1, 1, tp), out_map),
                pl.BlockSpec((1, 1, tp), out_map),
            ],
        ),
        compiler_params=pltpu.CompilerParams(
            dimension_semantics=("parallel", "parallel", "arbitrary"),
            vmem_limit_bytes=vmem_limit),
    )(logits, labels)

    # single cross-lane / cross-image reduction of the tiny partial buffers
    return jnp.sum(out_sum), jnp.sum(out_cnt)


# ----------------------------------------------------------------------------
# Plain-JAX glue: bilinear resize matching F.interpolate(align_corners=False),
# expressed as two interpolation matrices (MXU matmuls, no gathers, no upcast).
# ----------------------------------------------------------------------------
def _bilinear_matrix(in_size, out_size):
    """(out_size, in_size) matrix M with y = M @ x == 1-D bilinear resize."""
    scale = in_size / out_size
    pos = jnp.maximum((jnp.arange(out_size, dtype=jnp.float32) + 0.5) * scale
                      - 0.5, 0.0)
    lo = jnp.floor(pos).astype(jnp.int32)
    hi = jnp.minimum(lo + 1, in_size - 1)
    w_hi = pos - lo.astype(jnp.float32)
    w_lo = 1.0 - w_hi
    rows = jnp.arange(out_size)
    m = jnp.zeros((out_size, in_size), jnp.float32)
    m = m.at[rows, lo].add(w_lo)
    m = m.at[rows, hi].add(w_hi)
    return m


def _bilinear_resize_nchw_matmul(x, out_h, out_w):
    # TODO(synk): fuse this 4-tap upsample into the CE kernel (scalar-prefetch
    # index/weight tables) so the full-resolution logits never hit HBM.
    N, C, H, W = x.shape
    mh = _bilinear_matrix(H, out_h).astype(x.dtype)   # (out_h, H)
    mw = _bilinear_matrix(W, out_w).astype(x.dtype)   # (out_w, W)
    y = jnp.einsum('nchw,oh,pw->ncop', x, mh, mw,
                   preferred_element_type=jnp.float32)
    return y.astype(x.dtype)


# ----------------------------------------------------------------------------
# CrossEntropy.forward equivalent
# ----------------------------------------------------------------------------
def cross_entropy_forward(pred, target, ignore_label=-1):
    """pred: (N, C, ph, pw) float (f32/bf16), target: (N, h, w) signed int.
    Returns scalar mean cross-entropy over non-ignored pixels."""
    N, C, ph, pw = pred.shape
    _, h, w = target.shape
    if ph != h or pw != w:
        # matmul-formulated bilinear upsample, kept in the input dtype
        pred = _bilinear_resize_nchw_matmul(pred, h, w)

    # Pixel-on-lane layout straight from NCHW: pure reshape, no transpose,
    # no padding, no dtype upcast (cast to f32 happens inside the kernel).
    logits = pred.reshape(N, C, h * w)
    # NOTE: target must be a signed dtype for ignore_label=-1 to match.
    labels = target.reshape(N, 1, h * w).astype(jnp.int32)

    loss_sum, valid_cnt = _masked_ce_pallas(logits, labels, ignore_label)
    # reduction='mean' over non-ignored pixels (NaN if none, same as PyTorch)
    return loss_sum / valid_cnt


# ----------------------------------------------------------------------------
# Pure-JAX references for sanity checks
# ----------------------------------------------------------------------------
def _bilinear_resize_nchw(x, out_h, out_w):
    """Gather-based reference resize (align_corners=False)."""
    N, C, H, W = x.shape
    scale_h = H / out_h
    scale_w = W / out_w

    ys = jnp.maximum((jnp.arange(out_h, dtype=jnp.float32) + 0.5) * scale_h - 0.5, 0.0)
    xs = jnp.maximum((jnp.arange(out_w, dtype=jnp.float32) + 0.5) * scale_w - 0.5, 0.0)

    y0 = jnp.floor(ys).astype(jnp.int32)
    x0 = jnp.floor(xs).astype(jnp.int32)
    y1 = jnp.minimum(y0 + 1, H - 1)
    x1 = jnp.minimum(x0 + 1, W - 1)
    wy = (ys - y0.astype(jnp.float32))[:, None]
    wx = (xs - x0.astype(jnp.float32))[None, :]

    rows0 = jnp.take(x, y0, axis=2)
    rows1 = jnp.take(x, y1, axis=2)
    v00 = jnp.take(rows0, x0, axis=3)
    v01 = jnp.take(rows0, x1, axis=3)
    v10 = jnp.take(rows1, x0, axis=3)
    v11 = jnp.take(rows1, x1, axis=3)

    top = v00 * (1.0 - wx) + v01 * wx
    bot = v10 * (1.0 - wx) + v11 * wx
    return top * (1.0 - wy) + bot * wy


def _reference_loss(pred, target, ignore_label=-1):
    N, C, ph, pw = pred.shape
    _, h, w = target.shape
    if ph != h or pw != w:
        pred = _bilinear_resize_nchw(pred.astype(jnp.float32), h, w)
    logits = jnp.transpose(pred, (0, 2, 3, 1)).reshape(-1, C).astype(jnp.float32)
    labels = target.reshape(-1).astype(jnp.int32)
    lse = jax.nn.logsumexp(logits, axis=-1)
    picked = jnp.take_along_axis(
        logits, jnp.clip(labels, 0, C - 1)[:, None], axis=-1)[:, 0]
    valid = labels != ignore_label
    per_px = jnp.where(valid, lse - picked, 0.0)
    return jnp.sum(per_px) / jnp.sum(valid.astype(jnp.float32))


def _reference_flat(logits, labels, ignore_label=-1):
    C = logits.shape[1]
    lg = logits.astype(jnp.float32)
    lse = jax.nn.logsumexp(lg, axis=1)                       # (N, HW)
    lab = labels[:, 0, :]
    picked = jnp.take_along_axis(
        lg, jnp.clip(lab, 0, C - 1)[:, None, :], axis=1)[:, 0, :]
    valid = lab != ignore_label
    per = jnp.where(valid, lse - picked, 0.0)
    return jnp.sum(per) / jnp.sum(valid.astype(jnp.float32))


if __name__ == "__main__":
    key = jax.random.PRNGKey(0)
    k1, k2, k3, k4, k5, k6 = jax.random.split(key, 6)

    # --- Test 1: resize branch (pred at half resolution), N=2, C=4, 16x16 ---
    N, C, H, W = 2, 4, 16, 16
    pred = jax.random.normal(k1, (N, C, H // 2, W // 2), dtype=jnp.float32)
    target = jax.random.randint(k2, (N, H, W), minval=0, maxval=C,
                                dtype=jnp.int32)
    target = target.at[:, 0, :].set(-1)            # some ignored pixels
    loss = jax.block_until_ready(cross_entropy_forward(pred, target, -1))
    ref = jax.block_until_ready(_reference_loss(pred, target, -1))
    assert jnp.allclose(loss, ref, rtol=1e-5, atol=1e-5), ("test1", loss, ref)

    # --- Test 2: no resize, partial tail tile + 2-way pixel split (24x24) ---
    N2, C2, H2, W2 = 1, 5, 24, 24
    pred2 = jax.random.normal(k3, (N2, C2, H2, W2), dtype=jnp.float32)
    target2 = jax.random.randint(k4, (N2, H2, W2), minval=0, maxval=C2,
                                 dtype=jnp.int32)
    target2 = target2.at[:, :, 0].set(-1)
    loss2 = jax.block_until_ready(cross_entropy_forward(pred2, target2, -1))
    ref2 = jax.block_until_ready(_reference_loss(pred2, target2, -1))
    assert jnp.allclose(loss2, ref2, rtol=1e-5, atol=1e-5), ("test2", loss2, ref2)

    # --- Test 3: ragged split / clamped overflow tiles (direct kernel call) ---
    N3, C3, HW3 = 1, 7, 300
    logits3 = jax.random.normal(k5, (N3, C3, HW3), dtype=jnp.float32)
    labels3 = jax.random.randint(k6, (N3, 1, HW3), minval=0, maxval=C3,
                                 dtype=jnp.int32)
    labels3 = labels3.at[:, :, ::11].set(-1)
    s3, c3 = _masked_ce_pallas(logits3, labels3, -1, max_tile_p=128)
    loss3 = jax.block_until_ready(s3 / c3)
    ref3 = jax.block_until_ready(_reference_flat(logits3, labels3, -1))
    assert jnp.allclose(loss3, ref3, rtol=1e-5, atol=1e-5), ("test3", loss3, ref3)

    print("KERNEL_OK")
</pallas_src>

<mosaic_0001>
module attributes {stable_mosaic.version = 11 : i64} {
  func.func @_ce_kernel(%arg0: i32, %arg1: i32, %arg2: i32, %arg3: memref<1x4x256xf32, #tpu.memory_space<vmem>>, %arg4: memref<1x1x256xi32, #tpu.memory_space<vmem>>, %arg5: memref<1x1x256xf32, #tpu.memory_space<vmem>>, %arg6: memref<1x1x256xf32, #tpu.memory_space<vmem>>) attributes {dimension_semantics = [#tpu.dimension_semantics<parallel>, #tpu.dimension_semantics<parallel>, #tpu.dimension_semantics<arbitrary>], iteration_bounds = array<i64: 2, 1, 1>, scalar_prefetch = 0 : i64, scratch_operands = 0 : i64, tpu.core_type = #tpu.core_type<tc>, window_params = [{transform_indices = @transform_0, window_bounds = array<i64: 1, 4, 256>}, {transform_indices = @transform_1, window_bounds = array<i64: 1, 1, 256>}, {transform_indices = @transform_2, window_bounds = array<i64: 1, 1, 256>}, {transform_indices = @transform_3, window_bounds = array<i64: 1, 1, 256>}]} {
    %c0_i32 = arith.constant 0 : i32
    %0 = arith.cmpi eq, %arg2, %c0_i32 : i32
    %1 = arith.extui %0 : i1 to i32
    %c0_i32_0 = arith.constant 0 : i32
    %2 = arith.cmpi ne, %1, %c0_i32_0 : i32
    scf.if %2 {
      %cst_22 = arith.constant 0.000000e+00 : f32
      %34 = vector.broadcast %cst_22 : f32 to vector<1x1x256xf32>
      %c0_23 = arith.constant 0 : index
      %c0_24 = arith.constant 0 : index
      %c0_25 = arith.constant 0 : index
      %35 = vector.load %arg5[%c0_23, %c0_24, %c0_25] : memref<1x1x256xf32, #tpu.memory_space<vmem>>, vector<1x1x256xf32>
      tpu.vector_store %arg5[%c0_23, %c0_24, %c0_25], %34 {strides = array<i32>} : memref<1x1x256xf32, #tpu.memory_space<vmem>>, vector<1x1x256xf32>,
      %cst_26 = arith.constant 0.000000e+00 : f32
      %36 = vector.broadcast %cst_26 : f32 to vector<1x1x256xf32>
      %c0_27 = arith.constant 0 : index
      %c0_28 = arith.constant 0 : index
      %c0_29 = arith.constant 0 : index
      %37 = vector.load %arg6[%c0_27, %c0_28, %c0_29] : memref<1x1x256xf32, #tpu.memory_space<vmem>>, vector<1x1x256xf32>
      tpu.vector_store %arg6[%c0_27, %c0_28, %c0_29], %36 {strides = array<i32>} : memref<1x1x256xf32, #tpu.memory_space<vmem>>, vector<1x1x256xf32>,
    } else {
    }
    %c0 = arith.constant 0 : index
    %c0_1 = arith.constant 0 : index
    %c0_2 = arith.constant 0 : index
    %3 = vector.load %arg3[%c0, %c0_1, %c0_2] : memref<1x4x256xf32, #tpu.memory_space<vmem>>, vector<1x4x256xf32>
    %c0_3 = arith.constant 0 : index
    %c0_4 = arith.constant 0 : index
    %c0_5 = arith.constant 0 : index
    %4 = vector.load %arg4[%c0_3, %c0_4, %c0_5] : memref<1x1x256xi32, #tpu.memory_space<vmem>>, vector<1x1x256xi32>
    %c-1_i32 = arith.constant -1 : i32
    %5 = vector.broadcast %c-1_i32 : i32 to vector<1x1x256xi32>
    %6 = arith.cmpi ne, %4, %5 : vector<1x1x256xi32>
    %cst = arith.constant dense<0xFF800000> : vector<1x256xf32>
    %7 = vector.multi_reduction <maximumf>, %3, %cst [1] : vector<1x4x256xf32> to vector<1x256xf32>
    %8 = vector.shape_cast %7 : vector<1x256xf32> to vector<1x1x256xf32>
    %9 = vector.broadcast %8 : vector<1x1x256xf32> to vector<1x4x256xf32>
    %10 = arith.subf %3, %9 : vector<1x4x256xf32>
    %11 = math.exp %10 : vector<1x4x256xf32>
    %cst_6 = arith.constant dense<0.000000e+00> : vector<1x256xf32>
    %12 = vector.multi_reduction <add>, %11, %cst_6 [1] : vector<1x4x256xf32> to vector<1x256xf32>
    %13 = vector.shape_cast %12 : vector<1x256xf32> to vector<1x1x256xf32>
    %14 = tpu.iota {dimensions = array<i32: 1>} : vector<1x4x1xi32>
    %15 = vector.broadcast %14 : vector<1x4x1xi32> to vector<1x4x256xi32>
    %16 = vector.broadcast %4 : vector<1x1x256xi32> to vector<1x4x256xi32>
    %17 = arith.cmpi eq, %15, %16 : vector<1x4x256xi32>
    %cst_7 = arith.constant 0.000000e+00 : f32
    %18 = vector.broadcast %cst_7 : f32 to vector<1x4x256xf32>
    %19 = arith.select %17, %10, %18 : vector<1x4x256xi1>, vector<1x4x256xf32>
    %cst_8 = arith.constant dense<0.000000e+00> : vector<1x256xf32>
    %20 = vector.multi_reduction <add>, %19, %cst_8 [1] : vector<1x4x256xf32> to vector<1x256xf32>
    %21 = vector.shape_cast %20 : vector<1x256xf32> to vector<1x1x256xf32>
    %22 = math.log %13 : vector<1x1x256xf32>
    %23 = arith.subf %22, %21 : vector<1x1x256xf32>
    %cst_9 = arith.constant 0.000000e+00 : f32
    %24 = vector.broadcast %cst_9 : f32 to vector<1x1x256xf32>
    %25 = arith.select %6, %23, %24 : vector<1x1x256xi1>, vector<1x1x256xf32>
    %c0_10 = arith.constant 0 : index
    %c0_11 = arith.constant 0 : index
    %c0_12 = arith.constant 0 : index
    %26 = vector.load %arg5[%c0_10, %c0_11, %c0_12] : memref<1x1x256xf32, #tpu.memory_space<vmem>>, vector<1x1x256xf32>
    %27 = arith.addf %26, %25 : vector<1x1x256xf32>
    %c0_13 = arith.constant 0 : index
    %c0_14 = arith.constant 0 : index
    %c0_15 = arith.constant 0 : index
    %28 = vector.load %arg5[%c0_13, %c0_14, %c0_15] : memref<1x1x256xf32, #tpu.memory_space<vmem>>, vector<1x1x256xf32>
    tpu.vector_store %arg5[%c0_13, %c0_14, %c0_15], %27 {strides = array<i32>} : memref<1x1x256xf32, #tpu.memory_space<vmem>>, vector<1x1x256xf32>,
    %c0_16 = arith.constant 0 : index
    %c0_17 = arith.constant 0 : index
    %c0_18 = arith.constant 0 : index
    %29 = vector.load %arg6[%c0_16, %c0_17, %c0_18] : memref<1x1x256xf32, #tpu.memory_space<vmem>>, vector<1x1x256xf32>
    %30 = arith.extui %6 : vector<1x1x256xi1> to vector<1x1x256xi32>
    %31 = arith.sitofp %30 : vector<1x1x256xi32> to vector<1x1x256xf32>
    %32 = arith.addf %29, %31 : vector<1x1x256xf32>
    %c0_19 = arith.constant 0 : index
    %c0_20 = arith.constant 0 : index
    %c0_21 = arith.constant 0 : index
    %33 = vector.load %arg6[%c0_19, %c0_20, %c0_21] : memref<1x1x256xf32, #tpu.memory_space<vmem>>, vector<1x1x256xf32>
    tpu.vector_store %arg6[%c0_19, %c0_20, %c0_21], %32 {strides = array<i32>} : memref<1x1x256xf32, #tpu.memory_space<vmem>>, vector<1x1x256xf32>,
    return
  }
  func.func @transform_0(%arg0: i32, %arg1: i32, %arg2: i32) -> (i32, i32, i32) {
    %c1_i32 = arith.constant 1 : i32
    %0 = arith.muli %arg1, %c1_i32 : i32
    %1 = arith.addi %0, %arg2 : i32
    %c0_i32 = arith.constant 0 : i32
    %c0_i32_0 = arith.constant 0 : i32
    return %arg0, %c0_i32, %1 : i32, i32, i32
  }
  func.func @transform_1(%arg0: i32, %arg1: i32, %arg2: i32) -> (i32, i32, i32) {
    %c1_i32 = arith.constant 1 : i32
    %0 = arith.muli %arg1, %c1_i32 : i32
    %1 = arith.addi %0, %arg2 : i32
    %c0_i32 = arith.constant 0 : i32
    %c0_i32_0 = arith.constant 0 : i32
    return %arg0, %c0_i32, %1 : i32, i32, i32
  }
  func.func @transform_2(%arg0: i32, %arg1: i32, %arg2: i32) -> (i32, i32, i32) {
    %c1_i32 = arith.constant 1 : i32
    %0 = arith.muli %arg0, %c1_i32 : i32
    %1 = arith.addi %0, %arg1 : i32
    %c0_i32 = arith.constant 0 : i32
    %c0_i32_0 = arith.constant 0 : i32
    %c0_i32_1 = arith.constant 0 : i32
    return %1, %c0_i32, %c0_i32_0 : i32, i32, i32
  }
  func.func @transform_3(%arg0: i32, %arg1: i32, %arg2: i32) -> (i32, i32, i32) {
    %c1_i32 = arith.constant 1 : i32
    %0 = arith.muli %arg0, %c1_i32 : i32
    %1 = arith.addi %0, %arg1 : i32
    %c0_i32 = arith.constant 0 : i32
    %c0_i32_0 = arith.constant 0 : i32
    %c0_i32_1 = arith.constant 0 : i32
    return %1, %c0_i32, %c0_i32_0 : i32, i32, i32
  }
}

</mosaic_0001>

<bundles_post_ra>
// kernel: tpu_custom_call.1
= control target key start
LH: loop header
LB: loop body
LE: loop exit
PB: predicated region body
PF: predicated region fallthrough
CT: control target
= control target key end

     0   :  { %9 = vsyncpa [#allocation3], 0  ;;  %s1180_s0 = inlined_call_operand.hbm [shape: f32[2,4,256], index: 0, kind: input, shape index: {}]   ;;  %s1181_s1 = inlined_call_operand.hbm [shape: s32[2,1,256], index: 1, kind: input, shape index: {}]   ;;  %s1182_s2 = inlined_call_operand.hbm [shape: f32[2,1,256], index: 2, kind: output, shape index: {0}]   ;;  %s1183_s3 = inlined_call_operand.hbm [shape: f32[2,1,256], index: 3, kind: output, shape index: {1}]  }
   0x1   :  { %11 = vsyncpa [#allocation3 + $0x1], 0 }
   0x2   :  { %12 = vsyncpa [#allocation6], 0 }
   0x3   :  { %14 = vsyncpa [#allocation6 + $0x1], 0 }
   0x4   :  { %15 = vsyncpa [#allocation4], 0 }
   0x5   :  { %17 = vsyncpa [#allocation4 + $0x1], 0 }
   0x6   :  { %18 = vsyncpa [#allocation9], 0 }
   0x7   :  { %20 = vsyncpa [#allocation9 + $0x1], 0  ;;  %s899_s12 = smov 0   ;;  %s901_s13 = smov 0  }
   0x8   :  { %s903_s14 = smov 0   ;;  %s905_s15 = smov 0  }
   0x9   :  { %s907_s16 = smov 0   ;;  %s909_s17 = smov 0  }
   0xa LB: > { %s584_s18 = sadd.s32 4294967295, %s871_s17   ;;  %s585_s19 = sadd.s32 4294967294, %s871_s17   ;;  %s871_s17 = sphi %s909_s17, %s26_s17   ;;  %s867_s16 = sphi %s907_s16, %s1205_s16   ;;  %s863_s15 = sphi %s905_s15, %s1204_s15   ;;  %s859_s14 = sphi %s903_s14, %s1203_s14   ;;  %s855_s13 = sphi %s901_s13, %s1202_s13   ;;  %s851_s12 = sphi %s899_s12, %s1201_s12  }
   0xb   : > { %s45_s20 = sadd.s32 1, %s867_s16  ;;  %s56_s21 = sadd.s32 1, %s859_s14 }
   0xc   : > { %p47_p0 = scmp.ge.s32.totalorder %s45_s20, 2  ;;  %p63_p1 = scmp.ne.s32.totalorder %s859_s14, %s855_s13 }
   0xd   : > { %p64_p2 = scmp.eq.s32.totalorder %s871_s17, 0  ;;  %p69_p3 = scmp.ne.s32.totalorder %s855_s13, %s851_s12 }
   0xe   : > { %s1207_s20 = smov (%p47_p0, %s45_s20), 0  ;;  %p70_p5 = scmp.eq.s32.totalorder %s584_s18, 0 }
   0xf   : > { %p940_p4 = por %p64_p2, %p63_p1  ;;  %s51_s23 = ssub.s32 %s867_s16, %s1207_s20 }
  0x10   : > { %p125_p6 = scmp.eq.s32.totalorder %s584_s18, 1  ;;  %p54_p7 = scmp.eq.s32.totalorder %s51_s23, 0 }
  0x11   : > { %p946_p8 = por %p70_p5, %p69_p3  ;;  %p131_p10 = scmp.eq.s32.totalorder %s585_s19, 1 }
  0x12   : > { %p950_p9 = por %p125_p6, %p63_p1  ;;  %p634_p13 = scmp.lt.s32.totalorder %s871_s17, 2 }
  0x13   : > { %s1187_s24 = scalar_select %p946_p8, 1, 0 }
  0x14   : > { %s1188_s25 = scalar_select %p950_p9, 1, 0 }
  0x15   : > { %s955_s26 = scalar_select %p54_p7, %s859_s14, %s56_s21  }
  0x16   : > { %p957_p11 = por %p131_p10, %p69_p3  ;;  %s964_s28 = sand.u32 1, %s859_s14  }
  0x17   : > { %s588_s29 = sshll.u32 %s964_s28, 3  ;;  %s608_s30 = sshll.u32 %s867_s16, 7 }
  0x18   : > { %s1189_s27 = scalar_select %p957_p11, 1, 0 }
  0x19   : > { %s971_s6 = scalar_lea.hbm %s1180_s0, %s608_s30  ;;  %s183_s7 = scalar_lea.vmem [#allocation2], %s588_s29 }
  0x1a   : > { %s194_s8 = sshll.u32 %s183_s7, 4  ;;  %p977_p0 = pnand %p634_p13, %p940_p4  ;;  %s973_s8 = int_to_ptr.vmem [resolvable:$true] %s194_s8 }
  0x1b   : > { %s180_s10 = scalar_lea.sflag [#allocation3], %s964_s28  ;;  %s693_s11 = scalar_lea.hbm %s971_s6, 128 }
  0x1c   : > { %p694_p3 = scmp.ne.s32.totalorder %s971_s6, %s693_s11  ;;  %p695_p5 = pneg %p977_p0 }
  0x1d   : > { %s698_s21 = scalar_lea.hbm %s1180_s0, 256  ;;  %p699_p4 = scmp.lt.u32.totalorder %s971_s6, %s1180_s0 }
  0x1e   : > { %p696_p6 = pnand %p695_p5, %p694_p3  ;;  %p700_p10 = scmp.lt.u32.totalorder %s698_s21, %s693_s11 }
  0x1f   : > { %p702_p12 = scmp.lt.u32.totalorder %s693_s11, %s971_s6 }
  0x20   : > { %p697_p7 = pneg %p696_p6  ;;  %p701_p13 = por %p700_p10, %p699_p4 }
  0x22   : > { %p703_p1 = por %p702_p12, %p701_p13 }
  0x24   : > { %p704_p2 = pnand %p703_p1, %p697_p7 }
  0x26   : > { %707 = shalt.err (!%p704_p2)
}
  0x27   : > { %s708_s29 = scalar_lea.vmem %s973_s8, 128  ;;  %s873_s30 = smov [#allocation2]  }
  0x28   : > { %p709_p3 = scmp.ne.s32.totalorder %s973_s8, %s708_s29  ;;  %s713_s4 = sshll.u32 %s873_s30, 4  ;;  %s714_s4 = int_to_ptr.vmem [resolvable:$false] %s713_s4 }
  0x29   : > { %s715_s5 = scalar_lea.vmem %s714_s4, 256  ;;  %p716_p9 = scmp.lt.s32.totalorder %s973_s8, %s714_s4 }
  0x2a   : > { %p711_p6 = pnand %p709_p3, %p695_p5  ;;  %p717_p4 = scmp.lt.s32.totalorder %s715_s5, %s708_s29 }
  0x2c   : > { %p712_p11 = pneg %p711_p6  ;;  %p718_p10 = por %p717_p4, %p716_p9 }
  0x2e   : > { %p719_p12 = pnand %p718_p10, %p712_p11 }
  0x30   : > { %722 = shalt.err (!%p719_p12)
}
  0x31   : > { %623 = dma.hbm_to_vmem [thread:$0]  (!%p977_p0), %s971_s6, 128, %s973_s8, %s180_s10  }
  0x32   : > { %p1191_p1 = scmp.lt.s32.totalorder %s871_s17, 3  ;;  %p1192_p2 = scmp.ge.s32.totalorder %s871_s17, 1 }
  0x33   : > { %s591_s11 = sshll.u32 %s964_s28, 1  ;;  %s609_s18 = sshll.u32 %s867_s16, 5 }
  0x34   : > { %p1013_p7 = pnand %p1192_p2, %p1191_p1  ;;  %s1022_s22 = scalar_lea.hbm %s1181_s1, %s609_s18 }
  0x35   : > { %s205_s23 = scalar_lea.vmem [#allocation5], %s591_s11  ;;  %s202_s6 = scalar_lea.sflag [#allocation6], %s964_s28 }
  0x36   : > { %s1193_s7 = scalar_select %p1013_p7, 1, 0 }
  0x37   : > { %s216_s29 = sshll.u32 %s205_s23, 4  ;;  %s723_s8 = scalar_lea.hbm %s1022_s22, 32  ;;  %s217_s29 = int_to_ptr.vmem [resolvable:$true] %s216_s29 }
  0x38   : > { %p724_p9 = scmp.ne.s32.totalorder %s1022_s22, %s723_s8  ;;  %s728_s4 = scalar_lea.hbm %s1181_s1, 64 }
  0x39   : > { %p729_p3 = scmp.lt.u32.totalorder %s1022_s22, %s1181_s1  ;;  %p730_p6 = scmp.lt.u32.totalorder %s728_s4, %s723_s8 }
  0x3a   : > { %p726_p11 = pnand %p724_p9, %p695_p5  ;;  %p732_p10 = scmp.lt.u32.totalorder %s723_s8, %s1022_s22 }
  0x3b   : > { %p731_p4 = por %p730_p6, %p729_p3 }
  0x3c   : > { %p727_p13 = pneg %p726_p11 }
  0x3d   : > { %p733_p12 = por %p732_p10, %p731_p4 }
  0x3f   : > { %p734_p1 = pnand %p733_p12, %p727_p13 }
  0x41   : > { %737 = shalt.err (!%p734_p1)
}
  0x42   : > { %s738_s28 = scalar_lea.vmem %s217_s29, 32  ;;  %s874_s11 = smov [#allocation5]  }
  0x43   : > { %p739_p2 = scmp.ne.s32.totalorder %s217_s29, %s738_s28  ;;  %s743_s19 = sshll.u32 %s874_s11, 4  ;;  %s744_s19 = int_to_ptr.vmem [resolvable:$false] %s743_s19 }
  0x44   : > { %s745_s21 = scalar_lea.vmem %s744_s19, 64  ;;  %p746_p8 = scmp.lt.s32.totalorder %s217_s29, %s744_s19 }
  0x45   : > { %p741_p9 = pnand %p739_p2, %p695_p5  ;;  %p747_p7 = scmp.lt.s32.totalorder %s745_s21, %s738_s28 }
  0x47   : > { %p742_p11 = pneg %p741_p9  ;;  %p748_p3 = por %p747_p7, %p746_p8 }
  0x49   : > { %p749_p6 = pnand %p748_p3, %p742_p11 }
  0x4b   : > { %752 = shalt.err (!%p749_p6)
}
  0x4c   : > { %626 = dma.hbm_to_vmem [thread:$0]  (!%p977_p0), %s1022_s22, 32, %s217_s29, %s202_s6  }
  0x4d   : > { %p1194_p13 = scmp.ne.s32.totalorder %s1193_s7, 0 }
  0x4e   : > { %s1047_s23 = sand.u32 (!%p1194_p13), 1, %s855_s13   ;;  %p1195_p5 = scmp.ne.s32.totalorder (!%p1194_p13), %s1187_s24, 0 }
  0x4f   : > { %225 = sbr.rel (%p1194_p13) target bundleno = 194 (0xc2), region = 28  ;;  %s595_s8 = sshll.u32 (!%p1194_p13), %s1047_s23, 3 }
  0x50   : > { %s228_s10 = scalar_lea.sflag (!%p1194_p13), [#allocation3], %s1047_s23  ;;  %s231_s30 = scalar_lea.vmem (!%p1194_p13), [#allocation2], %s595_s8 }
  0x56   : > { %834 = dma.done.wait (%p1195_p5), %s228_s10, 128  }
  0x57   : > { %836 = vsyncadd (%p1195_p5), %s228_s10, 4294967168  ;;  %s596_s9 = sshll.u32 %s1047_s23, 1  ;;  %s237_s7 = scalar_lea.sflag [#allocation6], %s1047_s23 }
  0x58   : > { %s240_s22 = scalar_lea.vmem [#allocation5], %s596_s9 }
  0x59   : > { %838 = dma.done.wait (%p1195_p5), %s237_s7, 32  }
  0x5a   : > { %840 = vsyncadd (%p1195_p5), %s237_s7, 4294967264  ;;  %v283_v0 = vlaneseq  ;;  %s1065_s29 = scalar_lea.vmem [#allocation7], %s596_s9  ;;  %v875_v2 = vmov 0.0   ;;  %s272_s6 = scalar_lea.vmem [#allocation8], %s596_s9  ;;  %vm295_vm1 = vcmask 1043456   ;;  %v289_v3 = vld [vmem:[%s231_s30] sm:$0xff] }
  0x5b   : > { %v1072_v4 = vld [vmem:[%s240_s22] sm:$0x3]  ;;  %v293_v5 = vcombine.high %v289_v3, %v289_v3  ;;  %v296_v6 = vsel %vm295_vm1, %v289_v3, -inf  ;;  %s610_s24 = sshll.u32 %s863_s15, 5  ;;  %s438_s4 = sshll.u32 %s272_s6, 4  ;;  %s1087_s4 = int_to_ptr.vmem [resolvable:$true] %s438_s4 }
  0x5c   : > { %vm1061_vm0 = vcmp.lt.s32.totalorder %v283_v0, 256  ;;  %vm291_vm2 = vcmp.ne.s32.totalorder %v1072_v4, 4294967295  ;;  %v297_v7 = vrot.slane %v296_v6, 4  ;;  %s1085_s28 = scalar_lea.hbm %s1183_s3, %s610_s24  ;;  %s408_s11 = scalar_lea.sflag [#allocation9], %s1047_s23 }
  0x5d   : > { %287 = vst.msk [vmem:[%s1065_s29] sm:$0x3] %vm1061_vm0, %v875_v2  ;;  %288 = vst.msk [vmem:[%s272_s6] sm:$0x3] %vm1061_vm0, %v875_v2  ;;  %v599_v8 = vsel %vm291_vm2, 1.0, %v875_v2  ;;  %v303_v9 = vsel %vm295_vm1, %v293_v5, -inf }
  0x5e   : > { %v298_v11 = vmax.f32 %v296_v6, %v297_v7  ;;  %v304_v12 = vrot.slane %v303_v9, 4  ;;  %s753_s19 = scalar_lea.vmem %s1087_s4, 32  ;;  %p1198_p0 = scmp.ne.s32.totalorder %s1188_s25, 0 }
  0x5f   : > { %p754_p8 = scmp.ne.s32.totalorder %s1087_s4, %s753_s19  ;;  %s876_s21 = smov [#allocation8]  }
  0x60   : > { %v299_v14 = vrot.slane %v298_v11, 2  ;;  %v305_v15 = vmax.f32 %v303_v9, %v304_v12  ;;  %s757_s8 = sshll.u32 %s876_s21, 4  ;;  %s758_s8 = int_to_ptr.vmem [resolvable:$false] %s757_s8 }
  0x61   : > { %p755_p7 = pnand %p754_p8, %p1198_p0  ;;  %s759_s10 = scalar_lea.vmem %s758_s8, 64 }
  0x62   : > { %p760_p10 = scmp.lt.s32.totalorder %s1087_s4, %s758_s8  ;;  %p761_p12 = scmp.lt.s32.totalorder %s759_s10, %s753_s19 }
  0x63   : > { %p756_p4 = pneg %p755_p7 }
  0x64   : > { %v397_v10 = vld [vmem:[%s272_s6] sm:$0x3]  ;;  %p762_p1 = por %p761_p12, %p760_p10 }
  0x65   : > { %v400_v13 = vadd.f32 %v599_v8, %v397_v10 }
  0x66   : > { %p763_p2 = pnand %p762_p1, %p756_p4 }
  0x67   : > { %401 = vst.msk [vmem:[%s272_s6] sm:$0x3] %vm1061_vm0, %v400_v13 }
  0x68   : > { %766 = shalt.err (!%p763_p2)
}
  0x69   : > { %s767_s30 = scalar_lea.hbm %s1085_s28, 32  ;;  %s771_s22 = scalar_lea.hbm %s1183_s3, 64 }
  0x6a   : > { %p768_p9 = scmp.ne.s32.totalorder %s1085_s28, %s767_s30  ;;  %p772_p6 = scmp.lt.u32.totalorder %s1085_s28, %s1183_s3 }
  0x6b   : > { %p773_p13 = scmp.lt.u32.totalorder %s771_s22, %s767_s30  ;;  %p775_p8 = scmp.lt.u32.totalorder %s767_s30, %s1085_s28 }
  0x6c   : > { %p769_p11 = pnand %p768_p9, %p1198_p0 }
  0x6d   : > { %p774_p5 = por %p773_p13, %p772_p6 }
  0x6e   : > { %p770_p3 = pneg %p769_p11 }
  0x6f   : > { %p776_p7 = por %p775_p8, %p774_p5 }
  0x71   : > { %p777_p4 = pnand %p776_p7, %p770_p3 }
  0x73   : > { %780 = shalt.err (!%p777_p4)
}
  0x74   : > { %617 = dma.vmem_to_hbm [thread:$0]  (%p1198_p0), %s1087_s4, 32, %s1085_s28, %s408_s11   ;;  %v300_v16 = vmax.f32 %v298_v11, %v299_v14  ;;  %v306_v17 = vrot.slane %v305_v15, 2  ;;  %v335_v23 = vshrl.u32 %v283_v0, 7  ;;  %v877_v62 = vmov 1966171168  }
  0x75   : > { %v375_v63 = vunpack.c.l.s4 %v877_v62  ;;  %s423_s4 = sshll.u32 %s1065_s29, 4  ;;  %s1128_s11 = scalar_lea.hbm %s1182_s2, %s610_s24  ;;  %s1130_s4 = int_to_ptr.vmem [resolvable:$true] %s423_s4 }
  0x76   : > { %v301_v18 = vrot.slane %v300_v16, 1  ;;  %v307_v19 = vmax.f32 %v305_v15, %v306_v17  ;;  %v338_v26 = vsub.s32 0, %v335_v23  ;;  %v342_v28 = vsub.s32 1, %v335_v23  ;;  %v390_v15 = vld [vmem:[%s1065_s29] sm:$0x3]  ;;  %s403_s19 = scalar_lea.sflag [#allocation4], %s1047_s23 }
  0x77   : > { %v376_v6 = vunpack.c.0.s8 %v375_v63  ;;  %s781_s21 = scalar_lea.vmem %s1130_s4, 32  ;;  %s878_s15 = smov [#allocation7]  }
  0x78   : > { %v302_v20 = vmax.f32 %v300_v16, %v301_v18  ;;  %v308_v21 = vrot.slane %v307_v19, 1  ;;  %v339_v29 = vrot.slane %v1072_v4, %v338_v26  ;;  %v343_v30 = vrot.slane %v1072_v4, %v342_v28  ;;  %p782_p10 = scmp.ne.s32.totalorder %s1130_s4, %s781_s21  ;;  %s785_s8 = sshll.u32 %s878_s15, 4  ;;  %s786_s8 = int_to_ptr.vmem [resolvable:$false] %s785_s8 }
  0x79   : > { %v379_v11 = vsub.s32 %v376_v6, %v335_v23  ;;  %s787_s10 = scalar_lea.vmem %s786_s8, 64  ;;  %p788_p2 = scmp.lt.s32.totalorder %s1130_s4, %s786_s8 }
  0x7a   : > { %v309_v22 = vmax.f32 %v307_v19, %v308_v21  ;;  %vm344_vm3 = vcmp.eq.s32.totalorder %v335_v23, %v339_v29  ;;  %vm345_vm4 = vcmp.eq.s32.totalorder %v335_v23, %v343_v30  ;;  %p783_p12 = pnand %p782_p10, %p1198_p0  ;;  %p789_p9 = scmp.lt.s32.totalorder %s787_s10, %s781_s21 }
  0x7c   : > { %v312_v24 = vcombine.low %v302_v20, %v309_v22  ;;  %p784_p1 = pneg %p783_p12  ;;  %p790_p11 = por %p789_p9, %p788_p2 }
  0x7e   : > { %v314_v25 = vsub.f32 %v289_v3, %v312_v24  ;;  %p791_p3 = pnand %p790_p11, %p784_p1 }
  0x80   : > { %v315_v27 = vmul.f32 1.442695, %v314_v25  ;;  %v347_v31 = vcombine.high %v314_v25, %v314_v25  ;;  %v349_v32 = vsel %vm344_vm3, %v314_v25, 0.0 }
  0x81   : > { %v351_v35 = vsel %vm295_vm1, %v349_v32, 0.0 }
  0x82   : > { %687 = vpow2.f32 %v315_v27  ;;  %v350_v33 = vsel %vm345_vm4, %v347_v31, 0.0  ;;  %v352_v41 = vrot.slane %v351_v35, 4 }
  0x83   : > { %v358_v39 = vsel %vm295_vm1, %v350_v33, 0.0 }
  0x84   : > { %v359_v44 = vrot.slane %v358_v39, 4  ;;  %v353_v47 = vadd.f32 %v352_v41, %v351_v35 }
  0x86   : > { %v360_v50 = vadd.f32 %v359_v44, %v358_v39  ;;  %v354_v53 = vrot.slane %v353_v47, 2 }
  0x88   : > { %v361_v56 = vrot.slane %v360_v50, 2  ;;  %v355_v58 = vadd.f32 %v354_v53, %v353_v47 }
  0x8a   : > { %v362_v59 = vadd.f32 %v361_v56, %v360_v50  ;;  %v356_v60 = vrot.slane %v355_v58, 1 }
  0x8c   : > { %v688_v34 = vpop.eup %687  ;;  %v363_v61 = vrot.slane %v362_v59, 1  ;;  %v357_v0 = vadd.f32 %v356_v60, %v355_v58 }
  0x8d   : > { %v318_v36 = vcombine.high %v688_v34, %v688_v34  ;;  %v320_v37 = vsel %vm295_vm1, %v688_v34, 0.0 }
  0x8e   : > { %v321_v38 = vrot.slane %v320_v37, 4  ;;  %v364_v3 = vadd.f32 %v363_v61, %v362_v59 }
  0x8f   : > { %v327_v40 = vsel %vm295_vm1, %v318_v36, 0.0 }
  0x90   : > { %v322_v42 = vadd.f32 %v321_v38, %v320_v37  ;;  %v328_v43 = vrot.slane %v327_v40, 4 }
  0x92   : > { %v323_v45 = vrot.slane %v322_v42, 2  ;;  %v329_v46 = vadd.f32 %v328_v43, %v327_v40 }
  0x94   : > { %v324_v48 = vadd.f32 %v323_v45, %v322_v42  ;;  %v330_v49 = vrot.slane %v329_v46, 2 }
  0x96   : > { %v325_v51 = vrot.slane %v324_v48, 1  ;;  %v331_v52 = vadd.f32 %v330_v49, %v329_v46 }
  0x98   : > { %v326_v54 = vadd.f32 %v325_v51, %v324_v48  ;;  %v332_v55 = vrot.slane %v331_v52, 1 }
  0x9a   : > { %v333_v57 = vadd.f32 %v332_v55, %v331_v52  ;;  %689 = vlog2.f32 %v326_v54 }
  0x9c   : > { %691 = vlog2.f32 %v333_v57 }
  0xa4   : > { %v690_v2 = vpop.eup %689 }
  0xa5   : > { %v366_v5 = vmul.f32 0.6931472, %v690_v2 }
  0xa6   : > { %v692_v7 = vpop.eup %691 }
  0xa7   : > { %v368_v8 = vmul.f32 0.6931472, %v692_v7  ;;  %v369_v9 = vsub.f32 %v366_v5, %v357_v0 }
  0xa9   : > { %v370_v10 = vsub.f32 %v368_v8, %v364_v3 }
  0xab   : > { %v373_v12 = vcombine.low %v369_v9, %v370_v10 }
  0xad   : > { %v380_v13 = vrot.slane %v373_v12, %v379_v11 }
  0xaf   : > { %v387_v14 = vrot.slane %v380_v13, %v379_v11 }
  0xb1   : > { %v389_v16 = vsel %vm291_vm2, %v387_v14, 0.0 }
  0xb2   : > { %v391_v17 = vadd.f32 %v390_v15, %v389_v16 }
  0xb4   : > { %396 = vst.msk [vmem:[%s1065_s29] sm:$0x3] %vm1061_vm0, %v391_v17 }
  0xb5   : > { %794 = shalt.err (!%p791_p3)
}
  0xb6   : > { %s795_s23 = scalar_lea.hbm %s1128_s11, 32  ;;  %s799_s30 = scalar_lea.hbm %s1182_s2, 64 }
  0xb7   : > { %p796_p6 = scmp.ne.s32.totalorder %s1128_s11, %s795_s23  ;;  %p800_p8 = scmp.lt.u32.totalorder %s1128_s11, %s1182_s2 }
  0xb8   : > { %p801_p7 = scmp.lt.u32.totalorder %s799_s30, %s795_s23  ;;  %p803_p10 = scmp.lt.u32.totalorder %s795_s23, %s1128_s11 }
  0xb9   : > { %p797_p13 = pnand %p796_p6, %p1198_p0 }
  0xba   : > { %p802_p4 = por %p801_p7, %p800_p8 }
  0xbb   : > { %p798_p5 = pneg %p797_p13 }
  0xbc   : > { %p804_p12 = por %p803_p10, %p802_p4 }
  0xbe   : > { %p805_p1 = pnand %p804_p12, %p798_p5 }
  0xc0   : > { %808 = shalt.err (!%p805_p1)
}
  0xc1   : > { %616 = dma.vmem_to_hbm [thread:$0]  (%p1198_p0), %s1130_s4, 32, %s1128_s11, %s403_s19  }
  0xc2 PF: > { %s450_s22 = sand.u32 1, %s851_s12   ;;  %p1199_p2 = scmp.ne.s32.totalorder %s1189_s27, 0 }
  0xc3   : > { %p1200_p9 = scmp.ge.s32.totalorder %s871_s17, 2  ;;  %s451_s6 = scalar_lea.sflag [#allocation4], %s450_s22 }
  0xc5   : > { %p628_p11 = pnand %p1200_p9, %p1199_p2 }
  0xc7   : > { %842 = dma.done.wait (!%p628_p11), %s451_s6, 32  }
  0xc8   : > { %844 = vsyncadd (!%p628_p11), %s451_s6, 4294967264  ;;  %s460_s5 = scalar_lea.sflag [#allocation9], %s450_s22 }
  0xc9   : > { %846 = dma.done.wait (!%p628_p11), %s460_s5, 32  }
  0xca   : > { %848 = vsyncadd (!%p628_p11), %s460_s5, 4294967264  ;;  %s26_s17 = sadd.s32 1, %s871_s17   ;;  %s1201_s12 = smov %s855_s13 }
  0xcb   : > { %p23_p3 = scmp.ge.s32.totalorder %s26_s17, 4   ;;  %s1202_s13 = smov %s859_s14 }
  0xcc   : > { %s1203_s14 = smov %s955_s26  ;;  %s1204_s15 = smov %s867_s16 }
  0xcd   : > { %s1205_s16 = smov %s1207_s20  ;;  %25 = sbr.rel (!%p23_p3) target bundleno = 10 (0xa), region = 107 }
  0xd4   :  { %465 = vsyncpa [#allocation3], 1 }
  0xd5   :  { %467 = vsyncpa [#allocation3 + $0x1], 1 }
  0xd6   :  { %468 = vsyncpa [#allocation6], 1 }
  0xd7   :  { %470 = vsyncpa [#allocation6 + $0x1], 1 }
  0xd8   :  { %471 = vsyncpa [#allocation4], 1 }
  0xd9   :  { %473 = vsyncpa [#allocation4 + $0x1], 1 }
  0xda   :  { %474 = vsyncpa [#allocation9], 1 }
  0xdb   :  { %476 = vsyncpa [#allocation9 + $0x1], 1 }

</bundles_post_ra>
